<compile_context>
chip_gen: v7x
topology: tpu7x:2x2x1
jax: 0.10.0
libtpu: 0.0.40
codegen_flags: <defaults>
</compile_context>

<pallas_src>
import math
import jax
import jax.numpy as jnp
from jax import lax
from jax.experimental import pallas as pl
from jax.experimental.pallas import tpu as pltpu


def _attn_kernel(x_ref, wqkv_ref, bqkv_ref, o_ref):
    D = x_ref.shape[-1]
    x = x_ref[...]                                     # (B, S, D), native dtype

    # Fused QKV projection: one wide MXU matmul instead of three.
    qkv = lax.dot_general(
        x, wqkv_ref[...],
        dimension_numbers=(((2,), (0,)), ((), ())),
        preferred_element_type=jnp.float32,
    ) + bqkv_ref[...].astype(jnp.float32)              # (B, S, 3D) f32
    qkv = jnp.maximum(qkv, 0.0).astype(x.dtype)        # relu, back to native dtype

    # scale 1/sqrt(dim_k) is already folded into the q slice of wqkv/bqkv.
    q = qkv[:, :, :D]
    k = qkv[:, :, D:2 * D]
    v = qkv[:, :, 2 * D:]

    # s = q @ k^T (batched) by contracting the feature dim of both operands —
    # MXU consumes k in its native layout, no transpose materialized.
    s = lax.dot_general(
        q, k,
        dimension_numbers=(((2,), (2,)), ((0,), (0,))),
        preferred_element_type=jnp.float32)            # (B, S, S) f32

    # Numerically stable softmax, kept in f32.
    m = jnp.max(s, axis=-1, keepdims=True)
    e = jnp.exp(s - m)
    denom = jnp.sum(e, axis=-1, keepdims=True)
    p = e * pl.reciprocal(denom, approx=True)          # EUP vrcp (free slot)

    # TODO(synk): torch.nn.functional.dropout (training-mode, stochastic) has no
    # deterministic equivalent; kernel implements inference-mode (identity) dropout.

    out = lax.dot_general(
        p.astype(v.dtype), v,
        dimension_numbers=(((2,), (1,)), ((0,), (0,))),
        preferred_element_type=jnp.float32)            # (B, S, D)
    o_ref[...] = out.astype(o_ref.dtype)


def attention_model(x, wq, bq, wk, bk, wv, bv, *, dim_k):
    """x: (B, S, D); weights stored input-major (D_in, D_out); biases (1, D)."""
    B, S, D = x.shape
    scale = 1.0 / math.sqrt(dim_k)

    # Fold the softmax scale into the q projection (valid because scale > 0
    # commutes with relu) and fuse q|k|v into one (D, 3D) weight / (1, 3D) bias.
    wqkv = jnp.concatenate([wq * scale, wk, wv], axis=1).astype(x.dtype)
    bqkv = jnp.concatenate([bq * scale, bk, bv], axis=1).astype(x.dtype)

    return pl.pallas_call(
        _attn_kernel,
        out_shape=jax.ShapeDtypeStruct((B, S, D), x.dtype),
        grid_spec=pltpu.PrefetchScalarGridSpec(
            num_scalar_prefetch=0,
            grid=(1,),  # whole (tiny) problem resides in VMEM in a single step
            in_specs=[
                pl.BlockSpec((B, S, D), lambda i: (0, 0, 0)),     # x
                pl.BlockSpec((D, 3 * D), lambda i: (0, 0)),       # fused W_qkv
                pl.BlockSpec((1, 3 * D), lambda i: (0, 0)),       # fused b_qkv
            ],
            out_specs=pl.BlockSpec((B, S, D), lambda i: (0, 0, 0)),
        ),
        compiler_params=pltpu.CompilerParams(
            dimension_semantics=("arbitrary",)),
    )(x, wqkv, bqkv)


def reference(x, wq, bq, wk, bk, wv, bv, *, dim_k):
    q = jax.nn.relu(x @ wq + bq)
    k = jax.nn.relu(x @ wk + bk)
    v = jax.nn.relu(x @ wv + bv)
    s = jnp.einsum("bqd,bkd->bqk", q, k) / math.sqrt(dim_k)
    p = jax.nn.softmax(s, axis=-1)
    return jnp.einsum("bqk,bkd->bqd", p, v)


if __name__ == "__main__":
    B, S, D = 2, 8, 32          # batch, seq, hidden (dim_q == dim_k == dim_v == D)
    key = jax.random.PRNGKey(0)
    kx, kwq, kbq, kwk, kbk, kwv, kbv = jax.random.split(key, 7)

    x1 = jax.random.normal(kx, (B, S, D), dtype=jnp.float32)

    # Deterministic parameter init (uniform, roughly torch Linear default scale).
    lim = 1.0 / math.sqrt(D)
    wq = jax.random.uniform(kwq, (D, D), jnp.float32, -lim, lim)
    bq = jax.random.uniform(kbq, (1, D), jnp.float32, -lim, lim)
    wk = jax.random.uniform(kwk, (D, D), jnp.float32, -lim, lim)
    bk = jax.random.uniform(kbk, (1, D), jnp.float32, -lim, lim)
    wv = jax.random.uniform(kwv, (D, D), jnp.float32, -lim, lim)
    bv = jax.random.uniform(kbv, (1, D), jnp.float32, -lim, lim)

    out = attention_model(x1, wq, bq, wk, bk, wv, bv, dim_k=D)
    out = jax.block_until_ready(out)

    ref = reference(x1, wq, bq, wk, bk, wv, bv, dim_k=D)
    assert out.shape == (B, S, D)
    # Tolerance relaxed slightly vs. 1e-5: softmax denominator now uses the EUP
    # approximate reciprocal (approx=True); error stays well under 1e-3.
    assert jnp.allclose(out, ref, atol=1e-3, rtol=1e-3), "mismatch vs reference"

    print("KERNEL_OK")
</pallas_src>

<mosaic_0001>
module attributes {stable_mosaic.version = 11 : i64} {
  func.func @_attn_kernel(%arg0: i32, %arg1: memref<2x8x32xf32, #tpu.memory_space<vmem>>, %arg2: memref<32x96xf32, #tpu.memory_space<vmem>>, %arg3: memref<1x96xf32, #tpu.memory_space<vmem>>, %arg4: memref<2x8x32xf32, #tpu.memory_space<vmem>>) attributes {dimension_semantics = [#tpu.dimension_semantics<arbitrary>], iteration_bounds = array<i64: 1>, scalar_prefetch = 0 : i64, scratch_operands = 0 : i64, tpu.core_type = #tpu.core_type<tc>, window_params = [{pipeline_mode = #tpu.pipeline_mode<synchronous>, transform_indices = @transform_0, window_bounds = array<i64: 2, 8, 32>}, {pipeline_mode = #tpu.pipeline_mode<synchronous>, transform_indices = @transform_1, window_bounds = array<i64: 32, 96>}, {pipeline_mode = #tpu.pipeline_mode<synchronous>, transform_indices = @transform_2, window_bounds = array<i64: 1, 96>}, {pipeline_mode = #tpu.pipeline_mode<synchronous>, transform_indices = @transform_3, window_bounds = array<i64: 2, 8, 32>}]} {
    %c0 = arith.constant 0 : index
    %c0_0 = arith.constant 0 : index
    %c0_1 = arith.constant 0 : index
    %0 = vector.load %arg1[%c0, %c0_0, %c0_1] : memref<2x8x32xf32, #tpu.memory_space<vmem>>, vector<2x8x32xf32>
    %c0_2 = arith.constant 0 : index
    %c0_3 = arith.constant 0 : index
    %1 = vector.load %arg2[%c0_2, %c0_3] : memref<32x96xf32, #tpu.memory_space<vmem>>, vector<32x96xf32>
    %cst = arith.constant dense<0.000000e+00> : vector<2x8x96xf32>
    %2 = tpu.matmul %0, %1, %cst {dimension_numbers = #tpu.dot_dimension_numbers<[2], [0], [0, 1], [1], [0, 0, 0, 1, 1, 1], [], []>} : vector<2x8x32xf32>, vector<32x96xf32>, vector<2x8x96xf32> -> vector<2x8x96xf32>
    %c0_4 = arith.constant 0 : index
    %c0_5 = arith.constant 0 : index
    %3 = vector.load %arg3[%c0_4, %c0_5] : memref<1x96xf32, #tpu.memory_space<vmem>>, vector<1x96xf32>
    %4 = vector.shape_cast %3 : vector<1x96xf32> to vector<1x1x96xf32>
    %5 = vector.broadcast %4 : vector<1x1x96xf32> to vector<2x8x96xf32>
    %6 = arith.addf %2, %5 : vector<2x8x96xf32>
    %cst_6 = arith.constant 0.000000e+00 : f32
    %7 = vector.broadcast %cst_6 : f32 to vector<2x8x96xf32>
    %8 = arith.maximumf %6, %7 : vector<2x8x96xf32>
    %9 = vector.extract_strided_slice %8 {offsets = [0, 0, 0], sizes = [2, 8, 32], strides = [1, 1, 1]} : vector<2x8x96xf32> to vector<2x8x32xf32>
    %10 = vector.extract_strided_slice %8 {offsets = [0, 0, 32], sizes = [2, 8, 32], strides = [1, 1, 1]} : vector<2x8x96xf32> to vector<2x8x32xf32>
    %11 = vector.extract_strided_slice %8 {offsets = [0, 0, 64], sizes = [2, 8, 32], strides = [1, 1, 1]} : vector<2x8x96xf32> to vector<2x8x32xf32>
    %cst_7 = arith.constant dense<0.000000e+00> : vector<2x8x8xf32>
    %12 = tpu.matmul %9, %10, %cst_7 {dimension_numbers = #tpu.dot_dimension_numbers<[2], [2], [1], [1], [0, 0, 0, 1, 1, 1], [0], [0]>} : vector<2x8x32xf32>, vector<2x8x32xf32>, vector<2x8x8xf32> -> vector<2x8x8xf32>
    %cst_8 = arith.constant dense<0xFF800000> : vector<2x8xf32>
    %13 = vector.multi_reduction <maximumf>, %12, %cst_8 [2] : vector<2x8x8xf32> to vector<2x8xf32>
    %14 = vector.shape_cast %13 : vector<2x8xf32> to vector<2x8x1xf32>
    %15 = vector.broadcast %14 : vector<2x8x1xf32> to vector<2x8x8xf32>
    %16 = arith.subf %12, %15 : vector<2x8x8xf32>
    %17 = math.exp %16 : vector<2x8x8xf32>
    %cst_9 = arith.constant dense<0.000000e+00> : vector<2x8xf32>
    %18 = vector.multi_reduction <add>, %17, %cst_9 [2] : vector<2x8x8xf32> to vector<2x8xf32>
    %19 = vector.shape_cast %18 : vector<2x8xf32> to vector<2x8x1xf32>
    %20 = tpu.reciprocal %19 {approx = true} : vector<2x8x1xf32> -> vector<2x8x1xf32>
    %21 = vector.broadcast %20 : vector<2x8x1xf32> to vector<2x8x8xf32>
    %22 = arith.mulf %17, %21 : vector<2x8x8xf32>
    %cst_10 = arith.constant dense<0.000000e+00> : vector<2x8x32xf32>
    %23 = tpu.matmul %22, %11, %cst_10 {dimension_numbers = #tpu.dot_dimension_numbers<[2], [1], [1], [2], [0, 0, 0, 1, 1, 2], [0], [0]>} : vector<2x8x8xf32>, vector<2x8x32xf32>, vector<2x8x32xf32> -> vector<2x8x32xf32>
    %c0_11 = arith.constant 0 : index
    %c0_12 = arith.constant 0 : index
    %c0_13 = arith.constant 0 : index
    %24 = vector.load %arg4[%c0_11, %c0_12, %c0_13] : memref<2x8x32xf32, #tpu.memory_space<vmem>>, vector<2x8x32xf32>
    tpu.vector_store %arg4[%c0_11, %c0_12, %c0_13], %23 {strides = array<i32>} : memref<2x8x32xf32, #tpu.memory_space<vmem>>, vector<2x8x32xf32>,
    return
  }
  func.func @transform_0(%arg0: i32) -> (i32, i32, i32) {
    %c0_i32 = arith.constant 0 : i32
    %c0_i32_0 = arith.constant 0 : i32
    %c0_i32_1 = arith.constant 0 : i32
    %c0_i32_2 = arith.constant 0 : i32
    return %c0_i32, %c0_i32_0, %c0_i32_1 : i32, i32, i32
  }
  func.func @transform_1(%arg0: i32) -> (i32, i32) {
    %c0_i32 = arith.constant 0 : i32
    %c0_i32_0 = arith.constant 0 : i32
    %c0_i32_1 = arith.constant 0 : i32
    return %c0_i32, %c0_i32_0 : i32, i32
  }
  func.func @transform_2(%arg0: i32) -> (i32, i32) {
    %c0_i32 = arith.constant 0 : i32
    %c0_i32_0 = arith.constant 0 : i32
    %c0_i32_1 = arith.constant 0 : i32
    return %c0_i32, %c0_i32_0 : i32, i32
  }
  func.func @transform_3(%arg0: i32) -> (i32, i32, i32) {
    %c0_i32 = arith.constant 0 : i32
    %c0_i32_0 = arith.constant 0 : i32
    %c0_i32_1 = arith.constant 0 : i32
    %c0_i32_2 = arith.constant 0 : i32
    return %c0_i32, %c0_i32_0, %c0_i32_1 : i32, i32, i32
  }
}

</mosaic_0001>

<bundles_post_ra>
// kernel: tpu_custom_call.1
= control target key start
LH: loop header
LB: loop body
LE: loop exit
PB: predicated region body
PF: predicated region fallthrough
CT: control target
= control target key end

     0   :  { %8 = vsyncpa [#allocation3], 0  ;;  %s735_s0 = inlined_call_operand.hbm [shape: f32[2,8,32], index: 0, kind: input, shape index: {}]   ;;  %s736_s1 = inlined_call_operand.hbm [shape: f32[32,96], index: 1, kind: input, shape index: {}]   ;;  %s737_s2 = inlined_call_operand.vmem [shape: f32[1,96], index: 2, kind: input, shape index: {}]   ;;  %s738_s3 = inlined_call_operand.hbm [shape: f32[2,8,32], index: 3, kind: output, shape index: {}]  }
   0x1   :  { %9 = vsyncpa [#allocation6], 0 }
   0x2   :  { %10 = vsyncpa [#allocation4], 0  ;;  %s640_s12 = smov [#allocation2]   ;;  %s568_s16 = scalar_lea.hbm %s735_s0, 256 }
   0x3   :  { %s16_s13 = sshll.u32 %s640_s12, 4  ;;  %p569_p0 = scmp.ne.s32.totalorder %s735_s0, %s568_s16  ;;  %s17_s13 = int_to_ptr.vmem [resolvable:$true] %s16_s13 }
   0x4   :  { %p572_p1 = scmp.lt.u32.totalorder %s568_s16, %s735_s0 }
   0x6   :  { %p574_p2 = pnand %p572_p1, %p569_p0 }
   0x8   :  { %577 = shalt.err (!%p574_p2)
}
   0x9   :  { %s578_s21 = scalar_lea.vmem %s17_s13, 256  ;;  %p583_p4 = scmp.lt.s32.totalorder %s17_s13, %s17_s13 }
   0xa   :  { %p579_p3 = scmp.ne.s32.totalorder %s17_s13, %s578_s21  ;;  %p584_p5 = scmp.lt.s32.totalorder %s578_s21, %s578_s21 }
   0xc   :  { %p585_p6 = por %p584_p5, %p583_p4 }
   0xe   :  { %p586_p7 = pnand %p585_p6, %p579_p3 }
  0x10   :  { %589 = shalt.err (!%p586_p7)
}
  0x11   :  { %s641_s22 = smov 128   ;;  %s642_s23 = smov 8  }
  0x12   :  { %22 = dma.hbm_to_vmem [thread:$0]  %s735_s0, 256, %s17_s13, [#allocation3], %s641_s22, %s641_s22, %s642_s23  }
  0x13   :  { %s643_s26 = smov [#allocation5]   ;;  %s590_s30 = scalar_lea.hbm %s736_s1, 512 }
  0x14   :  { %s28_s27 = sshll.u32 %s643_s26, 4  ;;  %p591_p8 = scmp.ne.s32.totalorder %s736_s1, %s590_s30  ;;  %s29_s27 = int_to_ptr.vmem [resolvable:$true] %s28_s27 }
  0x15   :  { %p594_p9 = scmp.lt.u32.totalorder %s590_s30, %s736_s1 }
  0x17   :  { %p596_p10 = pnand %p594_p9, %p591_p8 }
  0x19   :  { %599 = shalt.err (!%p596_p10)
}
  0x1a   :  { %s600_s8 = scalar_lea.vmem %s29_s27, 512  ;;  %p605_p12 = scmp.lt.s32.totalorder %s29_s27, %s29_s27 }
  0x1b   :  { %p601_p11 = scmp.ne.s32.totalorder %s29_s27, %s600_s8  ;;  %p606_p13 = scmp.lt.s32.totalorder %s600_s8, %s600_s8 }
  0x1d   :  { %p607_p0 = por %p606_p13, %p605_p12 }
  0x1f   :  { %p608_p1 = pnand %p607_p0, %p601_p11 }
  0x21   :  { %611 = shalt.err (!%p608_p1)
}
  0x22   :  { %34 = dma.hbm_to_vmem [thread:$0]  %s736_s1, 512, %s29_s27, [#allocation6], %s641_s22, %s641_s22, %s642_s23  }
  0x23   :  { %634 = dma.done.wait [#allocation3], 256  }
  0x24   :  { %635 = vsyncadd [#allocation3], 4294967040 }
  0x25   :  { %636 = dma.done.wait [#allocation6], 512  }
  0x26   :  { %637 = vsyncadd [#allocation6], 4294966784  ;;  %vm56_vm0 = vcmask 261120   ;;  %v45_v0 = vld [vmem:[#allocation5] sm:$0xff]  ;;  %v46_v1 = vld [vmem:[#allocation5 + $0x8] sm:$0xff]  ;;  %v644_v8 = vmov 0.0  }
  0x27   :  { %v47_v2 = vld [vmem:[#allocation5 + $0x10] sm:$0xff]  ;;  %v543_v3 = vpack.c.bf16 %v46_v1, %v45_v0  ;;  %v48_v4 = vld [vmem:[#allocation5 + $0x18] sm:$0xff]  ;;  %523 = vmatprep.subr.mxu1 %v644_v8  ;;  %vm645_vm1 = vmmov 0   ;;  %s646_s11 = smov 96   ;;  %vm294_vm2 = vcmask 64512   ;;  %s648_s12 = smov [#allocation7]  }
  0x28   :  { %v43_v5 = vld [vmem:[#allocation2] sm:$0xff]  ;;  %v547_v6 = vpack.c.bf16 %v48_v4, %v47_v2  ;;  %v44_v7 = vld [vmem:[#allocation2 + $0x8] sm:$0xff]  ;;  %525 = vmatprep.mubr.msk.f32.mxu1 %vm645_vm1, %v644_v8  ;;  %s476_s13 = sshll.u32 %s648_s12, 4  ;;  %s477_s13 = int_to_ptr.vmem [resolvable:$true] %s476_s13 }
  0x29   :  { %520 = vmatprep.mubr.msk.f32.mxu0 %vm56_vm0, %v43_v5  ;;  %544 = vmatprep.subr.bf16.mxu0 %v543_v3  ;;  %v489_v9 = vld [vmem:[%s737_s2] ss:$0 sm:$0xff]  ;;  %s647_s2 = smov 64   ;;  %s612_s14 = scalar_lea.vmem %s477_s13, 256 }
  0x2a   :  { %546 = vmatpush3.bf16.msra.mxu0 %v543_v3  ;;  %p613_p2 = scmp.ne.s32.totalorder %s477_s13, %s612_s14  ;;  %p617_p3 = scmp.lt.s32.totalorder %s477_s13, %s477_s13 }
  0x2b   :  { %548 = vmatprep.subr.bf16.mxu0 %v547_v6  ;;  %p618_p4 = scmp.lt.s32.totalorder %s612_s14, %s612_s14 }
  0x2d   :  { %p619_p5 = por %p618_p4, %p617_p3 }
  0x2e   :  { %550 = vmatpush3.bf16.msra.mxu0 %v547_v6 }
  0x2f   :  { %533 = vmatprep.subr.mxu0 %v644_v8  ;;  %p620_p6 = pnand %p619_p5, %p613_p2 }
  0x31   :  { %521 = vmatmul.mubr.msk.f32.vlgmr.msra.gmra.mrb[0].mxu0 %vm56_vm0, %v44_v7 }
  0x32   :  { %535 = vmatprep.mubr.msk.f32.mxu0 %vm645_vm1, %v644_v8 }
 0x104   :  { %v522_v10 = vpop.f32.mrb[0].mxu0 }
 0x105   :  { %v129_v11 = vpop.f32.mrb[1].mxu0  ;;  %v135_v13 = vadd.f32 %v522_v10, %v489_v9 }
 0x106   :  { %v130_v12 = vadd.f32 %v489_v9, %v129_v11 }
 0x107   :  { %v139_v15 = vmax.f32 %v135_v13, 0.0 }
 0x108   :  { %v138_v14 = vmax.f32 %v130_v12, 0.0 }
 0x10a   :  { %141 = vrot.lane.b32.xlu0 %v138_v14, %s646_s11 }
 0x10e   :  { %218 = vrot.lane.b32.xlu0 %v139_v15, %s646_s11 }
 0x17c   :  { %v142_v16 = vpop.permute.xlu0 %141 }
 0x17d   :  { %524 = vmatpush3.xpose.msk.msra.mxu1 %vm56_vm0, %v142_v16 }
 0x17e   :  { %528 = vmatprep.subr.mxu1 %v644_v8 }
 0x180   :  { %526 = vmatmul.mubr.msk.f32.vlgmr.msra.gmra.mrb[0].mxu1 %vm56_vm0, %v138_v14  ;;  %v219_v17 = vpop.permute.xlu0 %218 }
 0x181   :  { %529 = vmatpush3.xpose.msk.msra.mxu1 %vm56_vm0, %v219_v17  ;;  %530 = vmatprep.mubr.msk.f32.mxu1 %vm645_vm1, %v644_v8 }
 0x182   :  { %538 = vmatprep.subr.mxu1 %v644_v8 }
 0x184   :  { %531 = vmatmul.mubr.msk.f32.vlgmr.msra.gmra.mrb[2].mxu1 %vm56_vm0, %v139_v15 }
 0x185   :  { %540 = vmatprep.mubr.msk.f32.mxu1 %vm645_vm1, %v644_v8 }
 0x253   :  { %v213_v18 = vpop.f32.mrb[0].mxu1 }
 0x254   :  { %v527_v19 = vpop.f32.mrb[1].mxu1  ;;  %v295_v20 = vsel %vm294_vm2, %v213_v18, -inf }
 0x255   :  { %296 = vmax.xlane.f32.xlu1 %v295_v20 }
 0x257   :  { %v290_v21 = vpop.f32.mrb[2].mxu1 }
 0x258   :  { %v532_v22 = vpop.f32.mrb[3].mxu1  ;;  %v298_v23 = vsel %vm294_vm2, %v290_v21, -inf }
 0x259   :  { %299 = vmax.xlane.f32.xlu1 %v298_v23 }
 0x26a   :  { %317 = vrot.lane.b32.xlu1 %v138_v14, %s647_s2 }
 0x2e2   :  { %v297_v24 = vpop.xlane.xlu1 %296 }
 0x2e3   :  { %v301_v25 = vsub.f32 %v213_v18, %v297_v24 }
 0x2e5   :  { %v303_v26 = vmul.f32 1.442695, %v301_v25 }
 0x2e6   :  { %v300_v27 = vpop.xlane.xlu1 %299 }
 0x2e7   :  { %560 = vpow2.f32 %v303_v26  ;;  %v302_v28 = vsub.f32 %v290_v21, %v300_v27 }
 0x2e9   :  { %v305_v29 = vmul.f32 1.442695, %v302_v28 }
 0x2ea   :  { %v318_v30 = vpop.permute.xlu1 %317 }
 0x2eb   :  { %562 = vpow2.f32 %v305_v29  ;;  %534 = vmatpush3.msra.mxu0 %v318_v30 }
 0x2f1   :  { %v561_v31 = vpop.eup %560 }
 0x2f2   :  { %v307_v32 = vsel %vm294_vm2, %v561_v31, 0.0 }
 0x2f3   :  { %308 = vadd.xlane.f32.xlu0 %v307_v32 }
 0x2f5   :  { %v563_v33 = vpop.eup %562 }
 0x2f6   :  { %v310_v34 = vsel %vm294_vm2, %v563_v33, 0.0 }
 0x2f7   :  { %311 = vadd.xlane.f32.xlu1 %v310_v34 }
 0x308   :  { %393 = vrot.lane.b32.xlu1 %v139_v15, %s647_s2 }
 0x380   :  { %v309_v35 = vpop.xlane.xlu0 %308 }
 0x381   :  { %564 = vrcp.f32 %v309_v35 }
 0x384   :  { %v312_v36 = vpop.xlane.xlu1 %311 }
 0x385   :  { %566 = vrcp.f32 %v312_v36 }
 0x388   :  { %v394_v37 = vpop.permute.xlu1 %393 }
 0x389   :  { %539 = vmatpush3.msra.mxu1 %v394_v37 }
 0x38b   :  { %v565_v38 = vpop.eup %564 }
 0x38c   :  { %v315_v39 = vmul.f32 %v565_v38, %v561_v31 }
 0x38e   :  { %536 = vmatmul.mubr.msk.f32.vlgmr.msra.gmra.mrb[2].mxu0 %vm294_vm2, %v315_v39 }
 0x38f   :  { %v567_v40 = vpop.eup %566 }
 0x390   :  { %v316_v41 = vmul.f32 %v567_v40, %v563_v33 }
 0x392   :  { %541 = vmatmul.mubr.msk.f32.vlgmr.msra.gmra.mrb[4].mxu1 %vm294_vm2, %v316_v41 }
 0x461   :  { %v389_v42 = vpop.f32.mrb[2].mxu0 }
 0x462   :  { %469 = vst.msk [vmem:[#allocation7] sm:$0xff] %vm56_vm0, %v389_v42  ;;  %v537_v43 = vpop.f32.mrb[3].mxu0 }
 0x465   :  { %v465_v44 = vpop.f32.mrb[4].mxu1 }
 0x466   :  { %470 = vst.msk [vmem:[#allocation7 + $0x8] sm:$0xff] %vm56_vm0, %v465_v44  ;;  %v542_v45 = vpop.f32.mrb[5].mxu1 }
 0x467   :  { %623 = shalt.err (!%p620_p6)
}
 0x468   :  { %s624_s17 = scalar_lea.hbm %s738_s3, 256 }
 0x469   :  { %p625_p7 = scmp.ne.s32.totalorder %s738_s3, %s624_s17  ;;  %p628_p8 = scmp.lt.u32.totalorder %s624_s17, %s738_s3 }
 0x46b   :  { %p630_p9 = pnand %p628_p8, %p625_p7 }
 0x46d   :  { %633 = shalt.err (!%p630_p9)
}
 0x46e   :  { %482 = dma.vmem_to_hbm [thread:$0]  %s477_s13, 256, %s738_s3, [#allocation4], %s641_s22, %s641_s22, %s642_s23  }
 0x46f   :  { %638 = dma.done.wait [#allocation4], 256  }
 0x470   :  { %639 = vsyncadd [#allocation4], 4294967040 }
 0x471   :  { %486 = vsyncpa [#allocation3], 1 }
 0x472   :  { %487 = vsyncpa [#allocation6], 1 }
 0x473   :  { %488 = vsyncpa [#allocation4], 1 }

</bundles_post_ra>
